<compile_context>
chip_gen: v6e
topology: v6e:2x2x1
jax: 0.10.0
libtpu: 0.0.40
codegen_flags: <defaults>
</compile_context>

<pallas_src>
import jax
import jax.numpy as jnp
from jax.experimental import pallas as pl
from jax.experimental.pallas import tpu as pltpu


_BN_EPS = 1e-5  # PyTorch BatchNorm1d default eps


def _pick_tile(dim, align, max_tile):
    """Largest multiple of `align` (<= max_tile) that divides `dim`, else the full dim."""
    start = min(max_tile, dim) // align * align
    for t in range(start, 0, -align):
        if dim % t == 0:
            return t
    return dim  # full-dim block is always legal


# ---------------------------------------------------------------------------
# Stage 1: hidden = relu(batchnorm(one_hot(d) @ W1^T))
# ---------------------------------------------------------------------------
def _fc1_bn_relu_kernel(d_ref, w1t_ref, gamma_ref, beta_ref, h_ref):
    # d_ref: [B, 1] int32, w1t_ref: [d_dim, tn], gamma/beta: [1, tn], h_ref: [B, tn]
    B = h_ref.shape[0]
    d_dim = w1t_ref.shape[0]

    # One-hot encoding built on the VPU (no HBM traffic for the one-hot matrix).
    lane = jax.lax.broadcasted_iota(jnp.int32, (B, d_dim), 1)
    onehot = (lane == d_ref[...]).astype(jnp.float32)

    # fc1 (Linear, bias=False) on the MXU.
    pre = jnp.dot(onehot, w1t_ref[...], preferred_element_type=jnp.float32)

    # BatchNorm1d, training-mode semantics: biased batch statistics per feature.
    # (Full batch is resident in this tile, so the stats are exact.)
    mean = jnp.mean(pre, axis=0, keepdims=True)
    var = jnp.mean((pre - mean) * (pre - mean), axis=0, keepdims=True)
    inv = jax.lax.rsqrt(var + _BN_EPS)
    bn = (pre - mean) * inv * gamma_ref[...] + beta_ref[...]

    h_ref[...] = jnp.maximum(bn, 0.0).astype(h_ref.dtype)


# ---------------------------------------------------------------------------
# Stage 2: loc = h @ W21^T + b21 ; scale = softplus(h @ W22^T + b22) + 1e-7
# ---------------------------------------------------------------------------
def _heads_kernel(h_ref, w21t_ref, b21_ref, w22t_ref, b22_ref, loc_ref, scale_ref):
    h = h_ref[...]
    loc = jnp.dot(h, w21t_ref[...], preferred_element_type=jnp.float32) + b21_ref[...]
    pre = jnp.dot(h, w22t_ref[...], preferred_element_type=jnp.float32) + b22_ref[...]

    # Numerically-stable softplus: max(x, 0) + log(1 + exp(-|x|))   (EUP exp/log).
    sp = jnp.maximum(pre, 0.0) + jnp.log(1.0 + jnp.exp(-jnp.abs(pre)))

    loc_ref[...] = loc.astype(loc_ref.dtype)
    scale_ref[...] = (sp + 1e-7).astype(scale_ref.dtype)


# ---------------------------------------------------------------------------
# Wrapper
# ---------------------------------------------------------------------------
def pzd_forward(d, w1_t, gamma, beta, w21_t, b21, w22_t, b22):
    """d: [B] int, w1_t: [d_dim, zd_dim], w21_t/w22_t: [zd_dim, zd_dim],
    gamma/beta/b21/b22: [1, zd_dim] f32.  Returns (zd_loc, zd_scale)."""
    B = d.shape[0]
    d_dim, zd_dim = w1_t.shape
    d2 = d.astype(jnp.int32).reshape(B, 1)

    # ---- Stage 1: grid over zd_dim feature tiles (batch stays whole for BN) ----
    tn_h = _pick_tile(zd_dim, 128, 512)
    hidden = pl.pallas_call(
        _fc1_bn_relu_kernel,
        out_shape=jax.ShapeDtypeStruct((B, zd_dim), jnp.float32),
        grid=(zd_dim // tn_h,),
        in_specs=[
            pl.BlockSpec((B, 1), lambda j: (0, 0)),
            pl.BlockSpec((d_dim, tn_h), lambda j: (0, j)),
            pl.BlockSpec((1, tn_h), lambda j: (0, j)),
            pl.BlockSpec((1, tn_h), lambda j: (0, j)),
        ],
        out_specs=pl.BlockSpec((B, tn_h), lambda j: (0, j)),
        compiler_params=pltpu.CompilerParams(
            dimension_semantics=("parallel",)),
    )(d2, w1_t, gamma, beta)

    # ---- Stage 2: (M, N)-tiled fused dual-head matmul, K (= zd_dim) un-tiled ----
    tm = _pick_tile(B, 8, 512)
    tn = _pick_tile(zd_dim, 128, 512)
    loc, scale = pl.pallas_call(
        _heads_kernel,
        out_shape=(jax.ShapeDtypeStruct((B, zd_dim), jnp.float32),
                   jax.ShapeDtypeStruct((B, zd_dim), jnp.float32)),
        grid=(B // tm, zd_dim // tn),
        in_specs=[
            pl.BlockSpec((tm, zd_dim), lambda i, j: (i, 0)),
            pl.BlockSpec((zd_dim, tn), lambda i, j: (0, j)),
            pl.BlockSpec((1, tn), lambda i, j: (0, j)),
            pl.BlockSpec((zd_dim, tn), lambda i, j: (0, j)),
            pl.BlockSpec((1, tn), lambda i, j: (0, j)),
        ],
        out_specs=(pl.BlockSpec((tm, tn), lambda i, j: (i, j)),
                   pl.BlockSpec((tm, tn), lambda i, j: (i, j))),
        compiler_params=pltpu.CompilerParams(
            dimension_semantics=("parallel", "parallel")),
    )(hidden, w21_t, b21, w22_t, b22)
    return loc, scale


# ---------------------------------------------------------------------------
# Parameter init matching the PyTorch __init__ (xavier_uniform weights,
# zero biases, BatchNorm gamma=1 / beta=0, fc1 has no bias).
# ---------------------------------------------------------------------------
def init_pzd_params(key, d_dim, zd_dim):
    k1, k2, k3 = jax.random.split(key, 3)

    def xavier(k, fan_out, fan_in):
        bound = jnp.sqrt(6.0 / (fan_in + fan_out))
        return jax.random.uniform(k, (fan_out, fan_in), jnp.float32, -bound, bound)

    return dict(
        w1=xavier(k1, zd_dim, d_dim),          # fc1 Linear weight  [zd_dim, d_dim]
        gamma=jnp.ones((1, zd_dim), jnp.float32),
        beta=jnp.zeros((1, zd_dim), jnp.float32),
        w21=xavier(k2, zd_dim, zd_dim),        # fc21 Linear weight [zd_dim, zd_dim]
        b21=jnp.zeros((1, zd_dim), jnp.float32),
        w22=xavier(k3, zd_dim, zd_dim),        # fc22 Linear weight [zd_dim, zd_dim]
        b22=jnp.zeros((1, zd_dim), jnp.float32),
    )


if __name__ == "__main__":
    key = jax.random.PRNGKey(0)
    kd, kp = jax.random.split(key)

    batch, d_dim, zd_dim = 8, 8, 32
    d = jax.random.randint(kd, (batch,), 0, d_dim, jnp.int32)
    p = init_pzd_params(kp, d_dim, zd_dim)

    loc, scale = pzd_forward(
        d, p["w1"].T, p["gamma"], p["beta"],
        p["w21"].T, p["b21"], p["w22"].T, p["b22"])
    loc, scale = jax.block_until_ready((loc, scale))

    # Pure-JAX reference with identical semantics.
    onehot = jax.nn.one_hot(d, d_dim, dtype=jnp.float32)
    pre = onehot @ p["w1"].T
    mean = jnp.mean(pre, axis=0, keepdims=True)
    var = jnp.mean((pre - mean) ** 2, axis=0, keepdims=True)
    hidden_ref = jnp.maximum(
        (pre - mean) / jnp.sqrt(var + _BN_EPS) * p["gamma"] + p["beta"], 0.0)
    loc_ref = hidden_ref @ p["w21"].T + p["b21"]
    scale_ref = jax.nn.softplus(hidden_ref @ p["w22"].T + p["b22"]) + 1e-7

    assert loc.shape == (batch, zd_dim) and scale.shape == (batch, zd_dim)
    assert jnp.allclose(loc, loc_ref, atol=1e-5, rtol=1e-5), "loc mismatch vs reference"
    assert jnp.allclose(scale, scale_ref, atol=1e-5, rtol=1e-5), "scale mismatch vs reference"

    print("KERNEL_OK")
</pallas_src>

<mosaic_0001>
module attributes {stable_mosaic.version = 11 : i64} {
  func.func @_fc1_bn_relu_kernel(%arg0: i32, %arg1: memref<8x1xi32, #tpu.memory_space<vmem>>, %arg2: memref<8x32xf32, #tpu.memory_space<vmem>>, %arg3: memref<1x32xf32, #tpu.memory_space<vmem>>, %arg4: memref<1x32xf32, #tpu.memory_space<vmem>>, %arg5: memref<8x32xf32, #tpu.memory_space<vmem>>) attributes {dimension_semantics = [#tpu.dimension_semantics<parallel>], iteration_bounds = array<i64: 1>, scalar_prefetch = 0 : i64, scratch_operands = 0 : i64, tpu.core_type = #tpu.core_type<tc>, window_params = [{pipeline_mode = #tpu.pipeline_mode<synchronous>, transform_indices = @transform_0, window_bounds = array<i64: 8, 1>}, {transform_indices = @transform_1, window_bounds = array<i64: 8, 32>}, {transform_indices = @transform_2, window_bounds = array<i64: 1, 32>}, {transform_indices = @transform_3, window_bounds = array<i64: 1, 32>}, {transform_indices = @transform_4, window_bounds = array<i64: 8, 32>}]} {
    %0 = tpu.iota {dimensions = array<i32: 1>} : vector<8x8xi32>
    %c0 = arith.constant 0 : index
    %c0_0 = arith.constant 0 : index
    %1 = vector.load %arg1[%c0, %c0_0] : memref<8x1xi32, #tpu.memory_space<vmem>>, vector<8x1xi32>
    %2 = vector.broadcast %1 : vector<8x1xi32> to vector<8x8xi32>
    %3 = arith.cmpi eq, %0, %2 : vector<8x8xi32>
    %4 = arith.extui %3 : vector<8x8xi1> to vector<8x8xi32>
    %5 = arith.sitofp %4 : vector<8x8xi32> to vector<8x8xf32>
    %c0_1 = arith.constant 0 : index
    %c0_2 = arith.constant 0 : index
    %6 = vector.load %arg2[%c0_1, %c0_2] : memref<8x32xf32, #tpu.memory_space<vmem>>, vector<8x32xf32>
    %cst = arith.constant dense<0.000000e+00> : vector<8x32xf32>
    %7 = tpu.matmul %5, %6, %cst {dimension_numbers = #tpu.dot_dimension_numbers<[1], [0], [0], [1], [0, 0, 1, 1], [], []>} : vector<8x8xf32>, vector<8x32xf32>, vector<8x32xf32> -> vector<8x32xf32>
    %cst_3 = arith.constant dense<0.000000e+00> : vector<32xf32>
    %8 = vector.multi_reduction <add>, %7, %cst_3 [0] : vector<8x32xf32> to vector<32xf32>
    %9 = vector.shape_cast %8 : vector<32xf32> to vector<1x32xf32>
    %cst_4 = arith.constant 8.000000e+00 : f32
    %10 = vector.broadcast %cst_4 : f32 to vector<1x32xf32>
    %11 = arith.divf %9, %10 : vector<1x32xf32>
    %12 = vector.broadcast %11 : vector<1x32xf32> to vector<8x32xf32>
    %13 = arith.subf %7, %12 : vector<8x32xf32>
    %14 = vector.broadcast %11 : vector<1x32xf32> to vector<8x32xf32>
    %15 = arith.subf %7, %14 : vector<8x32xf32>
    %16 = arith.mulf %13, %15 : vector<8x32xf32>
    %cst_5 = arith.constant dense<0.000000e+00> : vector<32xf32>
    %17 = vector.multi_reduction <add>, %16, %cst_5 [0] : vector<8x32xf32> to vector<32xf32>
    %18 = vector.shape_cast %17 : vector<32xf32> to vector<1x32xf32>
    %cst_6 = arith.constant 8.000000e+00 : f32
    %19 = vector.broadcast %cst_6 : f32 to vector<1x32xf32>
    %20 = arith.divf %18, %19 : vector<1x32xf32>
    %cst_7 = arith.constant 9.99999974E-6 : f32
    %21 = vector.broadcast %cst_7 : f32 to vector<1x32xf32>
    %22 = arith.addf %20, %21 : vector<1x32xf32>
    %23 = math.rsqrt %22 : vector<1x32xf32>
    %24 = vector.broadcast %11 : vector<1x32xf32> to vector<8x32xf32>
    %25 = arith.subf %7, %24 : vector<8x32xf32>
    %26 = vector.broadcast %23 : vector<1x32xf32> to vector<8x32xf32>
    %27 = arith.mulf %25, %26 : vector<8x32xf32>
    %c0_8 = arith.constant 0 : index
    %c0_9 = arith.constant 0 : index
    %28 = vector.load %arg3[%c0_8, %c0_9] : memref<1x32xf32, #tpu.memory_space<vmem>>, vector<1x32xf32>
    %29 = vector.broadcast %28 : vector<1x32xf32> to vector<8x32xf32>
    %30 = arith.mulf %27, %29 : vector<8x32xf32>
    %c0_10 = arith.constant 0 : index
    %c0_11 = arith.constant 0 : index
    %31 = vector.load %arg4[%c0_10, %c0_11] : memref<1x32xf32, #tpu.memory_space<vmem>>, vector<1x32xf32>
    %32 = vector.broadcast %31 : vector<1x32xf32> to vector<8x32xf32>
    %33 = arith.addf %30, %32 : vector<8x32xf32>
    %cst_12 = arith.constant 0.000000e+00 : f32
    %34 = vector.broadcast %cst_12 : f32 to vector<8x32xf32>
    %35 = arith.maximumf %33, %34 : vector<8x32xf32>
    %c0_13 = arith.constant 0 : index
    %c0_14 = arith.constant 0 : index
    %36 = vector.load %arg5[%c0_13, %c0_14] : memref<8x32xf32, #tpu.memory_space<vmem>>, vector<8x32xf32>
    tpu.vector_store %arg5[%c0_13, %c0_14], %35 {strides = array<i32>} : memref<8x32xf32, #tpu.memory_space<vmem>>, vector<8x32xf32>,
    return
  }
  func.func @transform_0(%arg0: i32) -> (i32, i32) {
    %c0_i32 = arith.constant 0 : i32
    %c0_i32_0 = arith.constant 0 : i32
    %c0_i32_1 = arith.constant 0 : i32
    return %c0_i32, %c0_i32_0 : i32, i32
  }
  func.func @transform_1(%arg0: i32) -> (i32, i32) {
    %c0_i32 = arith.constant 0 : i32
    %c0_i32_0 = arith.constant 0 : i32
    return %c0_i32, %arg0 : i32, i32
  }
  func.func @transform_2(%arg0: i32) -> (i32, i32) {
    %c0_i32 = arith.constant 0 : i32
    %c0_i32_0 = arith.constant 0 : i32
    return %c0_i32, %arg0 : i32, i32
  }
  func.func @transform_3(%arg0: i32) -> (i32, i32) {
    %c0_i32 = arith.constant 0 : i32
    %c0_i32_0 = arith.constant 0 : i32
    return %c0_i32, %arg0 : i32, i32
  }
  func.func @transform_4(%arg0: i32) -> (i32, i32) {
    %c0_i32 = arith.constant 0 : i32
    %c0_i32_0 = arith.constant 0 : i32
    return %c0_i32, %arg0 : i32, i32
  }
}

</mosaic_0001>

<bundles_post_ra>
// kernel: tpu_custom_call.1
= control target key start
LH: loop header
LB: loop body
LE: loop exit
PB: predicated region body
PF: predicated region fallthrough
CT: control target
= control target key end

     0   :  { %v197_v2 = vmov 0   ;;  %v198_v3 = vmov 0.0   ;;  %s244_s0 = inlined_call_operand.vmem [shape: s32[8,1], index: 0, kind: input, shape index: {}]   ;;  %s245_s1 = inlined_call_operand.vmem [shape: f32[8,32], index: 1, kind: input, shape index: {}]   ;;  %s246_s2 = inlined_call_operand.vmem [shape: f32[1,32], index: 2, kind: input, shape index: {}]   ;;  %s247_s3 = inlined_call_operand.vmem [shape: f32[1,32], index: 3, kind: input, shape index: {}]   ;;  %s248_s4 = inlined_call_operand.hbm [shape: f32[8,32], index: 4, kind: output, shape index: {}]  }
   0x1   :  { %v20_v0 = vld [vmem:[%s244_s0] sm:$0xff]  ;;  %172 = vset.pattern.permute.xlu0 %v197_v2  ;;  %163 = vmatprep.subr.mxu0 %v198_v3 }
   0x2   :  { %v27_v1 = vld [vmem:[%s245_s1] sm:$0xff] }
   0x3   :  { %9 = vsyncpa [#allocation3], 0  ;;  %22 = vperm.xlu0 %172, %v20_v0   ;;  %164 = vmatpush3.msra.mxu0 %v27_v1  ;;  %vm199_vm0 = vmmov 0   ;;  %v18_v4 = vlaneseq  ;;  %vm28_vm1 = vcmask 64512   ;;  %vm102_vm3 = vcmask 261120   ;;  %s200_s21 = smov [#allocation2]  }
   0x4   :  { %165 = vmatprep.mubr.msk.f32.mxu0 %vm199_vm0, %v198_v3  ;;  %v159_v30 = vld [vmem:[%s246_s2] ss:$0 sm:$0xff]  ;;  %s149_s22 = sshll.u32 %s200_s21, 4  ;;  %s150_s22 = int_to_ptr.vmem [resolvable:$true] %s149_s22 }
   0x5   :  { %v19_v5 = vand.u32 127, %v18_v4  ;;  %v160_v32 = vld [vmem:[%s247_s3] ss:$0 sm:$0xff]  ;;  %s175_s23 = scalar_lea.vmem %s150_s22, 128  ;;  %p180_p1 = scmp.lt.s32.totalorder %s150_s22, %s150_s22 }
   0x6   :  { %p176_p0 = scmp.ne.s32.totalorder %s150_s22, %s175_s23  ;;  %p181_p2 = scmp.lt.s32.totalorder %s175_s23, %s175_s23 }
   0x8   :  { %p182_p3 = por %p181_p2, %p180_p1 }
   0xa   :  { %p183_p4 = pnand %p182_p3, %p176_p0 }
  0x7e   :  { %v23_v6 = vpop.permute.xlu0 %22 }
  0x7f   :  { %vm24_vm2 = vcmp.eq.s32.totalorder %v19_v5, %v23_v6 }
  0x80   :  { %v157_v7 = vsel %vm24_vm2, 1.0, %v198_v3 }
  0x81   :  { %166 = vmatmul.mubr.msk.f32.vlgmr.msra.gmra.mxu0 %vm28_vm1, %v157_v7 }
 0x141   :  { %v98_v8 = vpop.f32.mrf.mxu0 }
 0x142   :  { %v103_v9 = vsel %vm102_vm3, %v98_v8, 0.0 }
 0x143   :  { %v104_v10 = vrot.slane %v103_v9, 4  ;;  %v167_v11 = vpop.f32.mrf.mxu0 }
 0x145   :  { %v105_v12 = vadd.f32 %v104_v10, %v103_v9 }
 0x147   :  { %v106_v13 = vrot.slane %v105_v12, 2 }
 0x149   :  { %v107_v14 = vadd.f32 %v106_v13, %v105_v12 }
 0x14b   :  { %v108_v15 = vrot.slane %v107_v14, 1 }
 0x14d   :  { %v109_v16 = vadd.f32 %v108_v15, %v107_v14 }
 0x14f   :  { %v111_v17 = vmul.f32 0.125, %v109_v16 }
 0x151   :  { %v112_v18 = vsub.f32 %v98_v8, %v111_v17 }
 0x153   :  { %v113_v19 = vmul.f32 %v112_v18, %v112_v18 }
 0x155   :  { %v114_v20 = vsel %vm102_vm3, %v113_v19, 0.0 }
 0x156   :  { %v115_v21 = vrot.slane %v114_v20, 4 }
 0x158   :  { %v116_v22 = vadd.f32 %v115_v21, %v114_v20 }
 0x15a   :  { %v117_v23 = vrot.slane %v116_v22, 2 }
 0x15c   :  { %v118_v24 = vadd.f32 %v117_v23, %v116_v22 }
 0x15e   :  { %v119_v25 = vrot.slane %v118_v24, 1 }
 0x160   :  { %v120_v26 = vadd.f32 %v119_v25, %v118_v24 }
 0x162   :  { %v121_v27 = vmul.f32 0.125, %v120_v26 }
 0x164   :  { %v122_v28 = vadd.f32 1e-05, %v121_v27 }
 0x166   :  { %173 = vrsqrt.f32 %v122_v28 }
 0x173   :  { %v174_v29 = vpop.eup %173 }
 0x174   :  { %v124_v31 = vmul.f32 %v174_v29, %v112_v18 }
 0x176   :  { %v132_v33 = vmul.f32 %v159_v30, %v124_v31 }
 0x178   :  { %v140_v34 = vadd.f32 %v160_v32, %v132_v33 }
 0x17a   :  { %v141_v35 = vmax.f32 %v140_v34, 0.0 }
 0x17c   :  { %142 = vst.msk [vmem:[#allocation2] sm:$0xff] %vm102_vm3, %v141_v35 }
 0x17d   :  { %186 = shalt.err (!%p183_p4)
}
 0x17e   :  { %152 = dma.vmem_to_hbm [thread:$0]  %s150_s22, 128, %s248_s4, [#allocation3]  }
 0x17f   :  { %195 = dma.done.wait [#allocation3], 128  }
 0x180   :  { %196 = vsyncadd [#allocation3], 4294967168 }
 0x181   :  { %156 = vsyncpa [#allocation3], 1 }

</bundles_post_ra>
